<compile_context>
chip_gen: v7x
topology: tpu7x:2x2x1
jax: 0.10.0
libtpu: 0.0.40
codegen_flags: <defaults>
</compile_context>

<pallas_src>
import math
import jax
import jax.numpy as jnp
from jax import lax
from jax.experimental import pallas as pl
from jax.experimental.pallas import tpu as pltpu

# ---- config (small, consistent with the module) ----
B, S, D = 2, 8, 32           # batch, seq, vector_dim
H = 4                        # num_attention_heads
DH = D // H                  # attention_head_size
RANK = 4                     # lora_rank
ALPHA = 16                   # lora_alpha
SCALING = ALPHA / RANK
INV_SQRT_DH = 1.0 / math.sqrt(DH)


def mha_kernel(x_ref, wqkv_ref, bqkv_ref, wo_ref, bo_ref, out_ref):
    x = x_ref[...]                                                     # (B*S, D)
    # One packed QKV projection for all heads (LoRA already folded into wqkv).
    qkv = jnp.dot(x, wqkv_ref[...], preferred_element_type=jnp.float32) + bqkv_ref[...]
    q_all = qkv[:, 0:H * DH]                                           # (B*S, H*DH)
    k_all = qkv[:, H * DH:2 * H * DH]
    v_all = qkv[:, 2 * H * DH:3 * H * DH]

    attn_rows = []
    for b in range(B):
        qb = q_all[b * S:(b + 1) * S]                                  # (S, H*DH)
        kb = k_all[b * S:(b + 1) * S]
        vb = v_all[b * S:(b + 1) * S]
        # Per-head (Sq, Sk) scores via dot_general contracting the last dims
        # (no explicit transpose); concatenate heads along lanes -> (Sq, H*Sk).
        sims = [
            lax.dot_general(qb[:, h * DH:(h + 1) * DH],
                            kb[:, h * DH:(h + 1) * DH],
                            (((1,), (1,)), ((), ())),
                            preferred_element_type=jnp.float32)
            for h in range(H)
        ]
        sim = jnp.concatenate(sims, axis=-1) * INV_SQRT_DH             # (Sq, H*Sk)
        # Reference applies F.softmax(..., dim=1) on (B, Sq, Sk) -> softmax over the
        # *query* axis, i.e. axis 0 here.  Each (head, key) column is independent,
        # so one fused cross-sublane reduction covers all heads.
        m = jnp.max(sim, axis=0, keepdims=True)
        e = jnp.exp(sim - m)
        probs = e / jnp.sum(e, axis=0, keepdims=True)
        heads = [
            jnp.dot(probs[:, h * S:(h + 1) * S], vb[:, h * DH:(h + 1) * DH],
                    preferred_element_type=jnp.float32)
            for h in range(H)
        ]
        attn_rows.append(jnp.concatenate(heads, axis=-1))              # (S, D)

    attn = jnp.concatenate(attn_rows, axis=0)                          # (B*S, D)
    # Single output projection for both batches.
    out_ref[...] = (jnp.dot(attn, wo_ref[...], preferred_element_type=jnp.float32)
                    + bo_ref[...])


def _pack_heads(w):   # (H, D, DH) -> (D, H*DH), head-major columns
    return jnp.concatenate([w[h] for h in range(H)], axis=-1)


def _pack_bias(b):    # (H, 1, DH) -> (1, H*DH)
    return jnp.concatenate([b[h] for h in range(H)], axis=-1)


def mha_forward(x, p):
    """MultiheadAttention.forward(x) with use_lora=True, output_attentions=False."""
    # Fold LoRA into the dense Q/V weights (exact in inference mode):
    #   W_eff = W + SCALING * A @ B
    wq_eff = p["wq"] + SCALING * jnp.einsum("hdr,hro->hdo", p["aq"], p["bqB"])
    wv_eff = p["wv"] + SCALING * jnp.einsum("hdr,hro->hdo", p["av"], p["bvB"])
    wqkv = jnp.concatenate(
        [_pack_heads(wq_eff), _pack_heads(p["wk"]), _pack_heads(wv_eff)], axis=-1)   # (D, 96)
    bqkv = jnp.concatenate(
        [_pack_bias(p["bq"]), _pack_bias(p["bk"]), _pack_bias(p["bv"])], axis=-1)    # (1, 96)

    x2d = x.reshape(B * S, D)
    args = (x2d, wqkv, bqkv, p["wo"], p["bo"])
    in_specs = [pl.BlockSpec(a.shape, lambda i, n=a.ndim: (0,) * n) for a in args]

    out2d = pl.pallas_call(
        mha_kernel,
        out_shape=jax.ShapeDtypeStruct((B * S, D), jnp.float32),
        grid=(1,),
        in_specs=in_specs,
        out_specs=pl.BlockSpec((B * S, D), lambda i: (0, 0)),
        compiler_params=pltpu.CompilerParams(dimension_semantics=("arbitrary",)),
    )(*args)
    return out2d.reshape(B, S, D)


def init_params(key):
    ks = jax.random.split(key, 16)
    n = lambda i, shape, s=0.05: (s * jax.random.normal(ks[i], shape)).astype(jnp.float32)
    p = {}
    p["wq"] = n(0, (H, D, DH));    p["bq"] = n(1, (H, 1, DH), 0.02)
    p["wk"] = n(2, (H, D, DH));    p["bk"] = n(3, (H, 1, DH), 0.02)
    p["wv"] = n(4, (H, D, DH));    p["bv"] = n(5, (H, 1, DH), 0.02)
    # LoRA params (module inits lora_B to zeros; nonzero here to exercise the path)
    p["aq"] = n(6, (H, D, RANK));  p["bqB"] = n(7, (H, RANK, DH))
    p["av"] = n(8, (H, D, RANK));  p["bvB"] = n(9, (H, RANK, DH))
    p["wo"] = n(10, (D, D));       p["bo"] = n(11, (1, D), 0.02)
    return p


def reference_mha(x, p):
    """Pure-JAX mirror of PyTorch MultiheadAttention.forward (use_lora=True)."""
    head_outs = []
    for h in range(H):
        q = x @ p["wq"][h] + p["bq"][h]
        k = x @ p["wk"][h] + p["bk"][h]
        v = x @ p["wv"][h] + p["bv"][h]
        q = q + (x @ p["aq"][h]) @ p["bqB"][h] * SCALING
        v = v + (x @ p["av"][h]) @ p["bvB"][h] * SCALING
        sim = jnp.einsum("bqd,bkd->bqk", q, k) / math.sqrt(DH)
        probs = jax.nn.softmax(sim, axis=1)            # dim=1, as in the reference
        head_outs.append(jnp.einsum("bqk,bkd->bqd", probs, v))
    attn = jnp.concatenate(head_outs, axis=-1) @ p["wo"] + p["bo"][0]
    return attn


if __name__ == "__main__":
    key = jax.random.PRNGKey(0)
    kx, kp = jax.random.split(key)
    x = jax.random.normal(kx, (B, S, D), dtype=jnp.float32)
    p = init_params(kp)

    out = jax.block_until_ready(mha_forward(x, p))
    ref = jax.block_until_ready(reference_mha(x, p))

    assert out.shape == (B, S, D)
    err = float(jnp.max(jnp.abs(out - ref)))
    if err > 1e-3:
        raise AssertionError(f"mismatch vs reference: max abs err = {err}")
    print("KERNEL_OK")
</pallas_src>

<mosaic_0001>
module attributes {stable_mosaic.version = 11 : i64} {
  func.func @mha_kernel(%arg0: i32, %arg1: memref<16x32xf32, #tpu.memory_space<vmem>>, %arg2: memref<32x96xf32, #tpu.memory_space<vmem>>, %arg3: memref<1x96xf32, #tpu.memory_space<vmem>>, %arg4: memref<32x32xf32, #tpu.memory_space<vmem>>, %arg5: memref<1x32xf32, #tpu.memory_space<vmem>>, %arg6: memref<16x32xf32, #tpu.memory_space<vmem>>) attributes {dimension_semantics = [#tpu.dimension_semantics<arbitrary>], iteration_bounds = array<i64: 1>, scalar_prefetch = 0 : i64, scratch_operands = 0 : i64, tpu.core_type = #tpu.core_type<tc>, window_params = [{pipeline_mode = #tpu.pipeline_mode<synchronous>, transform_indices = @transform_0, window_bounds = array<i64: 16, 32>}, {pipeline_mode = #tpu.pipeline_mode<synchronous>, transform_indices = @transform_1, window_bounds = array<i64: 32, 96>}, {pipeline_mode = #tpu.pipeline_mode<synchronous>, transform_indices = @transform_2, window_bounds = array<i64: 1, 96>}, {pipeline_mode = #tpu.pipeline_mode<synchronous>, transform_indices = @transform_3, window_bounds = array<i64: 32, 32>}, {pipeline_mode = #tpu.pipeline_mode<synchronous>, transform_indices = @transform_4, window_bounds = array<i64: 1, 32>}, {pipeline_mode = #tpu.pipeline_mode<synchronous>, transform_indices = @transform_5, window_bounds = array<i64: 16, 32>}]} {
    %c0 = arith.constant 0 : index
    %c0_0 = arith.constant 0 : index
    %0 = vector.load %arg1[%c0, %c0_0] : memref<16x32xf32, #tpu.memory_space<vmem>>, vector<16x32xf32>
    %c0_1 = arith.constant 0 : index
    %c0_2 = arith.constant 0 : index
    %1 = vector.load %arg2[%c0_1, %c0_2] : memref<32x96xf32, #tpu.memory_space<vmem>>, vector<32x96xf32>
    %cst = arith.constant dense<0.000000e+00> : vector<16x96xf32>
    %2 = tpu.matmul %0, %1, %cst {dimension_numbers = #tpu.dot_dimension_numbers<[1], [0], [0], [1], [0, 0, 1, 1], [], []>} : vector<16x32xf32>, vector<32x96xf32>, vector<16x96xf32> -> vector<16x96xf32>
    %c0_3 = arith.constant 0 : index
    %c0_4 = arith.constant 0 : index
    %3 = vector.load %arg3[%c0_3, %c0_4] : memref<1x96xf32, #tpu.memory_space<vmem>>, vector<1x96xf32>
    %4 = vector.broadcast %3 : vector<1x96xf32> to vector<16x96xf32>
    %5 = arith.addf %2, %4 : vector<16x96xf32>
    %6 = vector.extract_strided_slice %5 {offsets = [0, 0], sizes = [16, 32], strides = [1, 1]} : vector<16x96xf32> to vector<16x32xf32>
    %7 = vector.extract_strided_slice %5 {offsets = [0, 32], sizes = [16, 32], strides = [1, 1]} : vector<16x96xf32> to vector<16x32xf32>
    %8 = vector.extract_strided_slice %5 {offsets = [0, 64], sizes = [16, 32], strides = [1, 1]} : vector<16x96xf32> to vector<16x32xf32>
    %9 = vector.extract_strided_slice %6 {offsets = [0, 0], sizes = [8, 32], strides = [1, 1]} : vector<16x32xf32> to vector<8x32xf32>
    %10 = vector.extract_strided_slice %7 {offsets = [0, 0], sizes = [8, 32], strides = [1, 1]} : vector<16x32xf32> to vector<8x32xf32>
    %11 = vector.extract_strided_slice %8 {offsets = [0, 0], sizes = [8, 32], strides = [1, 1]} : vector<16x32xf32> to vector<8x32xf32>
    %12 = vector.extract_strided_slice %9 {offsets = [0, 0], sizes = [8, 8], strides = [1, 1]} : vector<8x32xf32> to vector<8x8xf32>
    %13 = vector.extract_strided_slice %10 {offsets = [0, 0], sizes = [8, 8], strides = [1, 1]} : vector<8x32xf32> to vector<8x8xf32>
    %cst_5 = arith.constant dense<0.000000e+00> : vector<8x8xf32>
    %14 = tpu.matmul %12, %13, %cst_5 {dimension_numbers = #tpu.dot_dimension_numbers<[1], [1], [0], [0], [0, 0, 1, 0], [], []>} : vector<8x8xf32>, vector<8x8xf32>, vector<8x8xf32> -> vector<8x8xf32>
    %15 = vector.extract_strided_slice %9 {offsets = [0, 8], sizes = [8, 8], strides = [1, 1]} : vector<8x32xf32> to vector<8x8xf32>
    %16 = vector.extract_strided_slice %10 {offsets = [0, 8], sizes = [8, 8], strides = [1, 1]} : vector<8x32xf32> to vector<8x8xf32>
    %cst_6 = arith.constant dense<0.000000e+00> : vector<8x8xf32>
    %17 = tpu.matmul %15, %16, %cst_6 {dimension_numbers = #tpu.dot_dimension_numbers<[1], [1], [0], [0], [0, 0, 1, 0], [], []>} : vector<8x8xf32>, vector<8x8xf32>, vector<8x8xf32> -> vector<8x8xf32>
    %18 = vector.extract_strided_slice %9 {offsets = [0, 16], sizes = [8, 8], strides = [1, 1]} : vector<8x32xf32> to vector<8x8xf32>
    %19 = vector.extract_strided_slice %10 {offsets = [0, 16], sizes = [8, 8], strides = [1, 1]} : vector<8x32xf32> to vector<8x8xf32>
    %cst_7 = arith.constant dense<0.000000e+00> : vector<8x8xf32>
    %20 = tpu.matmul %18, %19, %cst_7 {dimension_numbers = #tpu.dot_dimension_numbers<[1], [1], [0], [0], [0, 0, 1, 0], [], []>} : vector<8x8xf32>, vector<8x8xf32>, vector<8x8xf32> -> vector<8x8xf32>
    %21 = vector.extract_strided_slice %9 {offsets = [0, 24], sizes = [8, 8], strides = [1, 1]} : vector<8x32xf32> to vector<8x8xf32>
    %22 = vector.extract_strided_slice %10 {offsets = [0, 24], sizes = [8, 8], strides = [1, 1]} : vector<8x32xf32> to vector<8x8xf32>
    %cst_8 = arith.constant dense<0.000000e+00> : vector<8x8xf32>
    %23 = tpu.matmul %21, %22, %cst_8 {dimension_numbers = #tpu.dot_dimension_numbers<[1], [1], [0], [0], [0, 0, 1, 0], [], []>} : vector<8x8xf32>, vector<8x8xf32>, vector<8x8xf32> -> vector<8x8xf32>
    %24 = tpu.concatenate %14, %17, %20, %23 in 1 : vector<8x8xf32>, vector<8x8xf32>, vector<8x8xf32>, vector<8x8xf32> -> vector<8x32xf32>
    %cst_9 = arith.constant 0.353553385 : f32
    %25 = vector.broadcast %cst_9 : f32 to vector<8x32xf32>
    %26 = arith.mulf %24, %25 : vector<8x32xf32>
    %cst_10 = arith.constant dense<0xFF800000> : vector<32xf32>
    %27 = vector.multi_reduction <maximumf>, %26, %cst_10 [0] : vector<8x32xf32> to vector<32xf32>
    %28 = vector.shape_cast %27 : vector<32xf32> to vector<1x32xf32>
    %29 = vector.broadcast %28 : vector<1x32xf32> to vector<8x32xf32>
    %30 = arith.subf %26, %29 : vector<8x32xf32>
    %31 = math.exp %30 : vector<8x32xf32>
    %cst_11 = arith.constant dense<0.000000e+00> : vector<32xf32>
    %32 = vector.multi_reduction <add>, %31, %cst_11 [0] : vector<8x32xf32> to vector<32xf32>
    %33 = vector.shape_cast %32 : vector<32xf32> to vector<1x32xf32>
    %34 = vector.broadcast %33 : vector<1x32xf32> to vector<8x32xf32>
    %35 = arith.divf %31, %34 : vector<8x32xf32>
    %36 = vector.extract_strided_slice %35 {offsets = [0, 0], sizes = [8, 8], strides = [1, 1]} : vector<8x32xf32> to vector<8x8xf32>
    %37 = vector.extract_strided_slice %11 {offsets = [0, 0], sizes = [8, 8], strides = [1, 1]} : vector<8x32xf32> to vector<8x8xf32>
    %cst_12 = arith.constant dense<0.000000e+00> : vector<8x8xf32>
    %38 = tpu.matmul %36, %37, %cst_12 {dimension_numbers = #tpu.dot_dimension_numbers<[1], [0], [0], [1], [0, 0, 1, 1], [], []>} : vector<8x8xf32>, vector<8x8xf32>, vector<8x8xf32> -> vector<8x8xf32>
    %39 = vector.extract_strided_slice %35 {offsets = [0, 8], sizes = [8, 8], strides = [1, 1]} : vector<8x32xf32> to vector<8x8xf32>
    %40 = vector.extract_strided_slice %11 {offsets = [0, 8], sizes = [8, 8], strides = [1, 1]} : vector<8x32xf32> to vector<8x8xf32>
    %cst_13 = arith.constant dense<0.000000e+00> : vector<8x8xf32>
    %41 = tpu.matmul %39, %40, %cst_13 {dimension_numbers = #tpu.dot_dimension_numbers<[1], [0], [0], [1], [0, 0, 1, 1], [], []>} : vector<8x8xf32>, vector<8x8xf32>, vector<8x8xf32> -> vector<8x8xf32>
    %42 = vector.extract_strided_slice %35 {offsets = [0, 16], sizes = [8, 8], strides = [1, 1]} : vector<8x32xf32> to vector<8x8xf32>
    %43 = vector.extract_strided_slice %11 {offsets = [0, 16], sizes = [8, 8], strides = [1, 1]} : vector<8x32xf32> to vector<8x8xf32>
    %cst_14 = arith.constant dense<0.000000e+00> : vector<8x8xf32>
    %44 = tpu.matmul %42, %43, %cst_14 {dimension_numbers = #tpu.dot_dimension_numbers<[1], [0], [0], [1], [0, 0, 1, 1], [], []>} : vector<8x8xf32>, vector<8x8xf32>, vector<8x8xf32> -> vector<8x8xf32>
    %45 = vector.extract_strided_slice %35 {offsets = [0, 24], sizes = [8, 8], strides = [1, 1]} : vector<8x32xf32> to vector<8x8xf32>
    %46 = vector.extract_strided_slice %11 {offsets = [0, 24], sizes = [8, 8], strides = [1, 1]} : vector<8x32xf32> to vector<8x8xf32>
    %cst_15 = arith.constant dense<0.000000e+00> : vector<8x8xf32>
    %47 = tpu.matmul %45, %46, %cst_15 {dimension_numbers = #tpu.dot_dimension_numbers<[1], [0], [0], [1], [0, 0, 1, 1], [], []>} : vector<8x8xf32>, vector<8x8xf32>, vector<8x8xf32> -> vector<8x8xf32>
    %48 = tpu.concatenate %38, %41, %44, %47 in 1 : vector<8x8xf32>, vector<8x8xf32>, vector<8x8xf32>, vector<8x8xf32> -> vector<8x32xf32>
    %49 = vector.extract_strided_slice %6 {offsets = [8, 0], sizes = [8, 32], strides = [1, 1]} : vector<16x32xf32> to vector<8x32xf32>
    %50 = vector.extract_strided_slice %7 {offsets = [8, 0], sizes = [8, 32], strides = [1, 1]} : vector<16x32xf32> to vector<8x32xf32>
    %51 = vector.extract_strided_slice %8 {offsets = [8, 0], sizes = [8, 32], strides = [1, 1]} : vector<16x32xf32> to vector<8x32xf32>
    %52 = vector.extract_strided_slice %49 {offsets = [0, 0], sizes = [8, 8], strides = [1, 1]} : vector<8x32xf32> to vector<8x8xf32>
    %53 = vector.extract_strided_slice %50 {offsets = [0, 0], sizes = [8, 8], strides = [1, 1]} : vector<8x32xf32> to vector<8x8xf32>
    %cst_16 = arith.constant dense<0.000000e+00> : vector<8x8xf32>
    %54 = tpu.matmul %52, %53, %cst_16 {dimension_numbers = #tpu.dot_dimension_numbers<[1], [1], [0], [0], [0, 0, 1, 0], [], []>} : vector<8x8xf32>, vector<8x8xf32>, vector<8x8xf32> -> vector<8x8xf32>
    %55 = vector.extract_strided_slice %49 {offsets = [0, 8], sizes = [8, 8], strides = [1, 1]} : vector<8x32xf32> to vector<8x8xf32>
    %56 = vector.extract_strided_slice %50 {offsets = [0, 8], sizes = [8, 8], strides = [1, 1]} : vector<8x32xf32> to vector<8x8xf32>
    %cst_17 = arith.constant dense<0.000000e+00> : vector<8x8xf32>
    %57 = tpu.matmul %55, %56, %cst_17 {dimension_numbers = #tpu.dot_dimension_numbers<[1], [1], [0], [0], [0, 0, 1, 0], [], []>} : vector<8x8xf32>, vector<8x8xf32>, vector<8x8xf32> -> vector<8x8xf32>
    %58 = vector.extract_strided_slice %49 {offsets = [0, 16], sizes = [8, 8], strides = [1, 1]} : vector<8x32xf32> to vector<8x8xf32>
    %59 = vector.extract_strided_slice %50 {offsets = [0, 16], sizes = [8, 8], strides = [1, 1]} : vector<8x32xf32> to vector<8x8xf32>
    %cst_18 = arith.constant dense<0.000000e+00> : vector<8x8xf32>
    %60 = tpu.matmul %58, %59, %cst_18 {dimension_numbers = #tpu.dot_dimension_numbers<[1], [1], [0], [0], [0, 0, 1, 0], [], []>} : vector<8x8xf32>, vector<8x8xf32>, vector<8x8xf32> -> vector<8x8xf32>
    %61 = vector.extract_strided_slice %49 {offsets = [0, 24], sizes = [8, 8], strides = [1, 1]} : vector<8x32xf32> to vector<8x8xf32>
    %62 = vector.extract_strided_slice %50 {offsets = [0, 24], sizes = [8, 8], strides = [1, 1]} : vector<8x32xf32> to vector<8x8xf32>
    %cst_19 = arith.constant dense<0.000000e+00> : vector<8x8xf32>
    %63 = tpu.matmul %61, %62, %cst_19 {dimension_numbers = #tpu.dot_dimension_numbers<[1], [1], [0], [0], [0, 0, 1, 0], [], []>} : vector<8x8xf32>, vector<8x8xf32>, vector<8x8xf32> -> vector<8x8xf32>
    %64 = tpu.concatenate %54, %57, %60, %63 in 1 : vector<8x8xf32>, vector<8x8xf32>, vector<8x8xf32>, vector<8x8xf32> -> vector<8x32xf32>
    %cst_20 = arith.constant 0.353553385 : f32
    %65 = vector.broadcast %cst_20 : f32 to vector<8x32xf32>
    %66 = arith.mulf %64, %65 : vector<8x32xf32>
    %cst_21 = arith.constant dense<0xFF800000> : vector<32xf32>
    %67 = vector.multi_reduction <maximumf>, %66, %cst_21 [0] : vector<8x32xf32> to vector<32xf32>
    %68 = vector.shape_cast %67 : vector<32xf32> to vector<1x32xf32>
    %69 = vector.broadcast %68 : vector<1x32xf32> to vector<8x32xf32>
    %70 = arith.subf %66, %69 : vector<8x32xf32>
    %71 = math.exp %70 : vector<8x32xf32>
    %cst_22 = arith.constant dense<0.000000e+00> : vector<32xf32>
    %72 = vector.multi_reduction <add>, %71, %cst_22 [0] : vector<8x32xf32> to vector<32xf32>
    %73 = vector.shape_cast %72 : vector<32xf32> to vector<1x32xf32>
    %74 = vector.broadcast %73 : vector<1x32xf32> to vector<8x32xf32>
    %75 = arith.divf %71, %74 : vector<8x32xf32>
    %76 = vector.extract_strided_slice %75 {offsets = [0, 0], sizes = [8, 8], strides = [1, 1]} : vector<8x32xf32> to vector<8x8xf32>
    %77 = vector.extract_strided_slice %51 {offsets = [0, 0], sizes = [8, 8], strides = [1, 1]} : vector<8x32xf32> to vector<8x8xf32>
    %cst_23 = arith.constant dense<0.000000e+00> : vector<8x8xf32>
    %78 = tpu.matmul %76, %77, %cst_23 {dimension_numbers = #tpu.dot_dimension_numbers<[1], [0], [0], [1], [0, 0, 1, 1], [], []>} : vector<8x8xf32>, vector<8x8xf32>, vector<8x8xf32> -> vector<8x8xf32>
    %79 = vector.extract_strided_slice %75 {offsets = [0, 8], sizes = [8, 8], strides = [1, 1]} : vector<8x32xf32> to vector<8x8xf32>
    %80 = vector.extract_strided_slice %51 {offsets = [0, 8], sizes = [8, 8], strides = [1, 1]} : vector<8x32xf32> to vector<8x8xf32>
    %cst_24 = arith.constant dense<0.000000e+00> : vector<8x8xf32>
    %81 = tpu.matmul %79, %80, %cst_24 {dimension_numbers = #tpu.dot_dimension_numbers<[1], [0], [0], [1], [0, 0, 1, 1], [], []>} : vector<8x8xf32>, vector<8x8xf32>, vector<8x8xf32> -> vector<8x8xf32>
    %82 = vector.extract_strided_slice %75 {offsets = [0, 16], sizes = [8, 8], strides = [1, 1]} : vector<8x32xf32> to vector<8x8xf32>
    %83 = vector.extract_strided_slice %51 {offsets = [0, 16], sizes = [8, 8], strides = [1, 1]} : vector<8x32xf32> to vector<8x8xf32>
    %cst_25 = arith.constant dense<0.000000e+00> : vector<8x8xf32>
    %84 = tpu.matmul %82, %83, %cst_25 {dimension_numbers = #tpu.dot_dimension_numbers<[1], [0], [0], [1], [0, 0, 1, 1], [], []>} : vector<8x8xf32>, vector<8x8xf32>, vector<8x8xf32> -> vector<8x8xf32>
    %85 = vector.extract_strided_slice %75 {offsets = [0, 24], sizes = [8, 8], strides = [1, 1]} : vector<8x32xf32> to vector<8x8xf32>
    %86 = vector.extract_strided_slice %51 {offsets = [0, 24], sizes = [8, 8], strides = [1, 1]} : vector<8x32xf32> to vector<8x8xf32>
    %cst_26 = arith.constant dense<0.000000e+00> : vector<8x8xf32>
    %87 = tpu.matmul %85, %86, %cst_26 {dimension_numbers = #tpu.dot_dimension_numbers<[1], [0], [0], [1], [0, 0, 1, 1], [], []>} : vector<8x8xf32>, vector<8x8xf32>, vector<8x8xf32> -> vector<8x8xf32>
    %88 = tpu.concatenate %78, %81, %84, %87 in 1 : vector<8x8xf32>, vector<8x8xf32>, vector<8x8xf32>, vector<8x8xf32> -> vector<8x32xf32>
    %89 = tpu.concatenate %48, %88 in 0 : vector<8x32xf32>, vector<8x32xf32> -> vector<16x32xf32>
    %c0_27 = arith.constant 0 : index
    %c0_28 = arith.constant 0 : index
    %90 = vector.load %arg4[%c0_27, %c0_28] : memref<32x32xf32, #tpu.memory_space<vmem>>, vector<32x32xf32>
    %cst_29 = arith.constant dense<0.000000e+00> : vector<16x32xf32>
    %91 = tpu.matmul %89, %90, %cst_29 {dimension_numbers = #tpu.dot_dimension_numbers<[1], [0], [0], [1], [0, 0, 1, 1], [], []>} : vector<16x32xf32>, vector<32x32xf32>, vector<16x32xf32> -> vector<16x32xf32>
    %c0_30 = arith.constant 0 : index
    %c0_31 = arith.constant 0 : index
    %92 = vector.load %arg5[%c0_30, %c0_31] : memref<1x32xf32, #tpu.memory_space<vmem>>, vector<1x32xf32>
    %93 = vector.broadcast %92 : vector<1x32xf32> to vector<16x32xf32>
    %94 = arith.addf %91, %93 : vector<16x32xf32>
    %c0_32 = arith.constant 0 : index
    %c0_33 = arith.constant 0 : index
    %95 = vector.load %arg6[%c0_32, %c0_33] : memref<16x32xf32, #tpu.memory_space<vmem>>, vector<16x32xf32>
    tpu.vector_store %arg6[%c0_32, %c0_33], %94 {strides = array<i32>} : memref<16x32xf32, #tpu.memory_space<vmem>>, vector<16x32xf32>,
    return
  }
  func.func @transform_0(%arg0: i32) -> (i32, i32) {
    %c0_i32 = arith.constant 0 : i32
    %c0_i32_0 = arith.constant 0 : i32
    %c0_i32_1 = arith.constant 0 : i32
    return %c0_i32, %c0_i32_0 : i32, i32
  }
  func.func @transform_1(%arg0: i32) -> (i32, i32) {
    %c0_i32 = arith.constant 0 : i32
    %c0_i32_0 = arith.constant 0 : i32
    %c0_i32_1 = arith.constant 0 : i32
    return %c0_i32, %c0_i32_0 : i32, i32
  }
  func.func @transform_2(%arg0: i32) -> (i32, i32) {
    %c0_i32 = arith.constant 0 : i32
    %c0_i32_0 = arith.constant 0 : i32
    %c0_i32_1 = arith.constant 0 : i32
    return %c0_i32, %c0_i32_0 : i32, i32
  }
  func.func @transform_3(%arg0: i32) -> (i32, i32) {
    %c0_i32 = arith.constant 0 : i32
    %c0_i32_0 = arith.constant 0 : i32
    %c0_i32_1 = arith.constant 0 : i32
    return %c0_i32, %c0_i32_0 : i32, i32
  }
  func.func @transform_4(%arg0: i32) -> (i32, i32) {
    %c0_i32 = arith.constant 0 : i32
    %c0_i32_0 = arith.constant 0 : i32
    %c0_i32_1 = arith.constant 0 : i32
    return %c0_i32, %c0_i32_0 : i32, i32
  }
  func.func @transform_5(%arg0: i32) -> (i32, i32) {
    %c0_i32 = arith.constant 0 : i32
    %c0_i32_0 = arith.constant 0 : i32
    %c0_i32_1 = arith.constant 0 : i32
    return %c0_i32, %c0_i32_0 : i32, i32
  }
}

</mosaic_0001>

<bundles_post_ra>
// kernel: tpu_custom_call.1
= control target key start
LH: loop header
LB: loop body
LE: loop exit
PB: predicated region body
PF: predicated region fallthrough
CT: control target
= control target key end

     0   :  { %10 = vsyncpa [#allocation3], 0  ;;  %s2198_s0 = inlined_call_operand.hbm [shape: f32[16,32], index: 0, kind: input, shape index: {}]   ;;  %s2199_s1 = inlined_call_operand.hbm [shape: f32[32,96], index: 1, kind: input, shape index: {}]   ;;  %s2200_s2 = inlined_call_operand.vmem [shape: f32[1,96], index: 2, kind: input, shape index: {}]   ;;  %s2201_s3 = inlined_call_operand.hbm [shape: f32[32,32], index: 3, kind: input, shape index: {}]   ;;  %s2202_s4 = inlined_call_operand.vmem [shape: f32[1,32], index: 4, kind: input, shape index: {}]   ;;  %s2203_s5 = inlined_call_operand.hbm [shape: f32[16,32], index: 5, kind: output, shape index: {}]  }
   0x1   :  { %11 = vsyncpa [#allocation6], 0 }
   0x2   :  { %12 = vsyncpa [#allocation4], 0  ;;  %s1923_s18 = smov [#allocation5]   ;;  %s1924_s20 = smov [#allocation2]  }
   0x3   :  { %s30_s19 = sshll.u32 %s1923_s18, 4  ;;  %s18_s21 = sshll.u32 %s1924_s20, 4  ;;  %s31_s19 = int_to_ptr.vmem [resolvable:$true] %s30_s19  ;;  %s1974_s21 = int_to_ptr.vmem [resolvable:$true] %s18_s21 }
   0x4   :  { %s1829_s24 = scalar_lea.hbm %s2199_s1, 512 }
   0x5   :  { %p1830_p0 = scmp.ne.s32.totalorder %s2199_s1, %s1829_s24  ;;  %p1833_p1 = scmp.lt.u32.totalorder %s1829_s24, %s2199_s1 }
   0x7   :  { %p1835_p2 = pnand %p1833_p1, %p1830_p0 }
   0x9   :  { %1838 = shalt.err (!%p1835_p2)
}
   0xa   :  { %s1839_s29 = scalar_lea.vmem %s31_s19, 512  ;;  %p1844_p4 = scmp.lt.s32.totalorder %s31_s19, %s31_s19 }
   0xb   :  { %p1840_p3 = scmp.ne.s32.totalorder %s31_s19, %s1839_s29  ;;  %p1845_p5 = scmp.lt.s32.totalorder %s1839_s29, %s1839_s29 }
   0xd   :  { %p1846_p6 = por %p1845_p5, %p1844_p4 }
   0xf   :  { %p1847_p7 = pnand %p1846_p6, %p1840_p3 }
  0x11   :  { %1850 = shalt.err (!%p1847_p7)
}
  0x12   :  { %s1925_s30 = smov 128   ;;  %s1926_s6 = smov 8  }
  0x13   :  { %36 = dma.hbm_to_vmem [thread:$0]  %s2199_s1, 512, %s31_s19, [#allocation6], %s1925_s30, %s1925_s30, %s1926_s6  }
  0x14   :  { %s1851_s11 = scalar_lea.hbm %s2198_s0, 256 }
  0x15   :  { %p1852_p8 = scmp.ne.s32.totalorder %s2198_s0, %s1851_s11  ;;  %p1855_p9 = scmp.lt.u32.totalorder %s1851_s11, %s2198_s0 }
  0x17   :  { %p1857_p10 = pnand %p1855_p9, %p1852_p8 }
  0x19   :  { %1860 = shalt.err (!%p1857_p10)
}
  0x1a   :  { %s1861_s16 = scalar_lea.vmem %s1974_s21, 256  ;;  %p1866_p12 = scmp.lt.s32.totalorder %s1974_s21, %s1974_s21 }
  0x1b   :  { %p1862_p11 = scmp.ne.s32.totalorder %s1974_s21, %s1861_s16  ;;  %p1867_p13 = scmp.lt.s32.totalorder %s1861_s16, %s1861_s16 }
  0x1d   :  { %p1868_p0 = por %p1867_p13, %p1866_p12 }
  0x1f   :  { %p1869_p1 = pnand %p1868_p0, %p1862_p11 }
  0x21   :  { %1872 = shalt.err (!%p1869_p1)
}
  0x22   :  { %24 = dma.hbm_to_vmem [thread:$0]  %s2198_s0, 256, %s1974_s21, [#allocation3], %s1925_s30, %s1925_s30, %s1926_s6  }
  0x23   :  { %s1927_s18 = smov [#allocation7]   ;;  %s1873_s23 = scalar_lea.hbm %s2201_s3, 512 }
  0x24   :  { %s44_s19 = sshll.u32 %s1927_s18, 4  ;;  %p1874_p2 = scmp.ne.s32.totalorder %s2201_s3, %s1873_s23  ;;  %s45_s19 = int_to_ptr.vmem [resolvable:$true] %s44_s19 }
  0x25   :  { %p1877_p3 = scmp.lt.u32.totalorder %s1873_s23, %s2201_s3 }
  0x27   :  { %p1879_p4 = pnand %p1877_p3, %p1874_p2 }
  0x29   :  { %1882 = shalt.err (!%p1879_p4)
}
  0x2a   :  { %s1883_s28 = scalar_lea.vmem %s45_s19, 512  ;;  %p1888_p6 = scmp.lt.s32.totalorder %s45_s19, %s45_s19 }
  0x2b   :  { %p1884_p5 = scmp.ne.s32.totalorder %s45_s19, %s1883_s28  ;;  %p1889_p7 = scmp.lt.s32.totalorder %s1883_s28, %s1883_s28 }
  0x2d   :  { %p1890_p8 = por %p1889_p7, %p1888_p6 }
  0x2f   :  { %p1891_p9 = pnand %p1890_p8, %p1884_p5 }
  0x31   :  { %1894 = shalt.err (!%p1891_p9)
}
  0x32   :  { %50 = dma.hbm_to_vmem [thread:$0]  %s2201_s3, 512, %s45_s19, [#allocation6], %s1925_s30, %s1925_s30, %s1926_s6  }
  0x33   :  { %1917 = dma.done.wait [#allocation3], 256  }
  0x34   :  { %1918 = vsyncadd [#allocation3], 4294967040 }
  0x35   :  { %1919 = dma.done.wait [#allocation6], 1024  }
  0x36   :  { %1920 = vsyncadd [#allocation6], 4294966272  ;;  %vm75_vm0 = vcmask 261120   ;;  %v64_v0 = vld [vmem:[#allocation5] sm:$0xff]  ;;  %v65_v1 = vld [vmem:[#allocation5 + $0x8] sm:$0xff]  ;;  %v1928_v8 = vmov 0.0  }
  0x37   :  { %v66_v2 = vld [vmem:[#allocation5 + $0x10] sm:$0xff]  ;;  %v1784_v3 = vpack.c.bf16 %v65_v1, %v64_v0  ;;  %v67_v4 = vld [vmem:[#allocation5 + $0x18] sm:$0xff]  ;;  %1693 = vmatprep.subr.mxu1 %v1928_v8  ;;  %vm1929_vm1 = vmmov 0   ;;  %s1930_s7 = smov 120   ;;  %s1931_s8 = smov 96   ;;  %vm160_vm2 = vcmask 64512  }
  0x38   :  { %v62_v5 = vld [vmem:[#allocation2] sm:$0xff]  ;;  %v1788_v6 = vpack.c.bf16 %v67_v4, %v66_v2  ;;  %v63_v7 = vld [vmem:[#allocation2 + $0x8] sm:$0xff]  ;;  %1695 = vmatprep.mubr.msk.f32.mxu1 %vm1929_vm1, %v1928_v8  ;;  %s1932_s9 = smov 80   ;;  %s1933_s10 = smov 88   ;;  %vm482_vm3 = vcmask 130048   ;;  %vm484_vm4 = vcmask 195584  }
  0x39   :  { %1690 = vmatprep.mubr.msk.f32.mxu0 %vm75_vm0, %v62_v5  ;;  %1785 = vmatprep.subr.bf16.mxu0 %v1784_v3  ;;  %v1608_v9 = vld [vmem:[%s2200_s2] ss:$0 sm:$0xff]  ;;  %s1934_s11 = smov 72   ;;  %s1935_s2 = smov 112  }
  0x3a   :  { %1787 = vmatpush3.bf16.msra.mxu0 %v1784_v3  ;;  %s1936_s12 = smov 104   ;;  %s1937_s13 = smov 16  }
  0x3b   :  { %1789 = vmatprep.subr.bf16.mxu0 %v1788_v6  ;;  %s1938_s14 = smov 64   ;;  %s1939_s15 = smov 24  }
  0x3c   :  { %s1940_s16 = smov 48   ;;  %s1941_s1 = smov 56  }
  0x3d   :  { %s1942_s17 = smov 40   ;;  %s1943_s20 = smov [#allocation8]  }
  0x3e   :  { %1791 = vmatpush3.bf16.msra.mxu0 %v1788_v6  ;;  %s1595_s22 = sshll.u32 %s1943_s20, 4  ;;  %s1596_s22 = int_to_ptr.vmem [resolvable:$true] %s1595_s22 }
  0x3f   :  { %1713 = vmatprep.subr.mxu0 %v1928_v8  ;;  %s1895_s23 = scalar_lea.vmem %s1596_s22, 256  ;;  %p1900_p11 = scmp.lt.s32.totalorder %s1596_s22, %s1596_s22 }
  0x40   :  { %p1896_p10 = scmp.ne.s32.totalorder %s1596_s22, %s1895_s23  ;;  %p1901_p12 = scmp.lt.s32.totalorder %s1895_s23, %s1895_s23 }
  0x41   :  { %1691 = vmatmul.mubr.msk.f32.vlgmr.msra.gmra.mrb[0].mxu0 %vm75_vm0, %v63_v7 }
  0x42   :  { %1715 = vmatprep.mubr.msk.f32.mxu0 %vm1929_vm1, %v1928_v8  ;;  %p1902_p13 = por %p1901_p12, %p1900_p11 }
  0x44   :  { %p1903_p0 = pnand %p1902_p13, %p1896_p10 }
 0x114   :  { %v1692_v10 = vpop.f32.mrb[0].mxu0 }
 0x115   :  { %v2037_v11 = vadd.f32 %v1692_v10, %v1608_v9  ;;  %v148_v12 = vpop.f32.mrb[1].mxu0 }
 0x116   :  { %v149_v13 = vadd.f32 %v1608_v9, %v148_v12 }
 0x118   :  { %235 = vrot.lane.b32.xlu1 %v149_v13, %s1930_s7  ;;  %158 = vrot.lane.b32.xlu0 %v149_v13, %s1931_s8 }
 0x11c   :  { %315 = vrot.lane.b32.xlu1 %v149_v13, %s1932_s9  ;;  %237 = vrot.lane.b32.xlu0 %v149_v13, %s1933_s10 }
 0x120   :  { %393 = vrot.lane.b32.xlu1 %v149_v13, %s1934_s11  ;;  %313 = vrot.lane.b32.xlu0 %v149_v13, %s1935_s2 }
 0x124   :  { %391 = vrot.lane.b32.xlu0 %v149_v13, %s1936_s12 }
 0x18a   :  { %v236_v14 = vpop.permute.xlu1 %235  ;;  %v159_v15 = vpop.permute.xlu0 %158 }
 0x18b   :  { %1694 = vmatpush3.xpose.msk.msra.mxu1 %vm160_vm2, %v159_v15 }
 0x18c   :  { %1698 = vmatprep.subr.mxu1 %v1928_v8 }
 0x18e   :  { %1696 = vmatmul.mubr.msk.f32.vlgmr.msra.gmra.mrb[0].mxu1 %vm160_vm2, %v149_v13  ;;  %v238_v16 = vpop.permute.xlu0 %237  ;;  %v316_v17 = vpop.permute.xlu1 %315 }
 0x18f   :  { %1699 = vmatpush3.xpose.msk.msra.mxu1 %vm160_vm2, %v238_v16  ;;  %1700 = vmatprep.mubr.msk.f32.mxu1 %vm1929_vm1, %v1928_v8 }
 0x190   :  { %1703 = vmatprep.subr.mxu1 %v1928_v8 }
 0x192   :  { %1701 = vmatmul.mubr.msk.f32.vlgmr.msra.gmra.mrb[2].mxu1 %vm160_vm2, %v236_v14  ;;  %v314_v18 = vpop.permute.xlu0 %313  ;;  %v394_v19 = vpop.permute.xlu1 %393 }
 0x193   :  { %1704 = vmatpush3.xpose.msk.msra.mxu1 %vm160_vm2, %v316_v17  ;;  %1705 = vmatprep.mubr.msk.f32.mxu1 %vm1929_vm1, %v1928_v8 }
 0x194   :  { %1708 = vmatprep.subr.mxu1 %v1928_v8 }
 0x196   :  { %1706 = vmatmul.mubr.msk.f32.vlgmr.msra.gmra.mrb[4].mxu1 %vm160_vm2, %v314_v18  ;;  %v392_v20 = vpop.permute.xlu0 %391 }
 0x197   :  { %1709 = vmatpush3.xpose.msk.msra.mxu1 %vm160_vm2, %v394_v19  ;;  %1710 = vmatprep.mubr.msk.f32.mxu1 %vm1929_vm1, %v1928_v8 }
 0x198   :  { %1718 = vmatprep.subr.mxu1 %v1928_v8 }
 0x19a   :  { %1711 = vmatmul.mubr.msk.f32.vlgmr.msra.gmra.mrb[6].mxu1 %vm160_vm2, %v392_v20 }
 0x19b   :  { %1720 = vmatprep.mubr.msk.f32.mxu1 %vm1929_vm1, %v1928_v8 }
 0x261   :  { %v231_v21 = vpop.f32.mrb[0].mxu1 }
 0x262   :  { %v1697_v22 = vpop.f32.mrb[1].mxu1 }
 0x265   :  { %v309_v23 = vpop.f32.mrb[2].mxu1 }
 0x266   :  { %470 = vrot.lane.b32.xlu1 %v309_v23, %s1926_s6  ;;  %v1702_v24 = vpop.f32.mrb[3].mxu1 }
 0x269   :  { %v387_v25 = vpop.f32.mrb[4].mxu1 }
 0x26a   :  { %474 = vrot.lane.b32.xlu0 %v387_v25, %s1937_s13  ;;  %v1707_v26 = vpop.f32.mrb[5].mxu1 }
 0x26d   :  { %v465_v27 = vpop.f32.mrb[6].mxu1 }
 0x26e   :  { %506 = vrot.lane.b32.xlu0 %v149_v13, %s1938_s14  ;;  %478 = vrot.lane.b32.xlu1 %v465_v27, %s1939_s15  ;;  %v1712_v28 = vpop.f32.mrb[7].mxu1 }
 0x272   :  { %661 = vrot.lane.b32.xlu0 %v149_v13, %s1940_s16  ;;  %584 = vrot.lane.b32.xlu1 %v149_v13, %s1941_s1 }
 0x276   :  { %738 = vrot.lane.b32.xlu0 %v149_v13, %s1942_s17  ;;  %829 = vrot.lane.b32.xlu1 %v2037_v11, %s1931_s8 }
 0x27a   :  { %907 = vrot.lane.b32.xlu0 %v2037_v11, %s1933_s10 }
 0x2d8   :  { %v471_v29 = vpop.permute.xlu1 %470 }
 0x2d9   :  { %v481_v31 = vsel %vm160_vm2, %v231_v21, %v471_v29 }
 0x2dc   :  { %v475_v30 = vpop.permute.xlu0 %474 }
 0x2dd   :  { %v483_v32 = vsel %vm482_vm3, %v481_v31, %v475_v30 }
 0x2e0   :  { %v479_v33 = vpop.permute.xlu1 %478  ;;  %v507_v34 = vpop.permute.xlu0 %506 }
 0x2e1   :  { %v485_v35 = vsel %vm484_vm4, %v483_v32, %v479_v33  ;;  %1714 = vmatpush3.msra.mxu0 %v507_v34 }
 0x2e2   :  { %v486_v36 = vmul.f32 0.35355338, %v485_v35  ;;  %1723 = vmatprep.subr.mxu0 %v1928_v8 }
 0x2e4   :  { %v487_v37 = vsel %vm75_vm0, %v486_v36, -inf  ;;  %v585_v38 = vpop.permute.xlu1 %584  ;;  %v662_v57 = vpop.permute.xlu0 %661 }
 0x2e5   :  { %v488_v39 = vrot.slane %v487_v37, 4  ;;  %1719 = vmatpush3.msra.mxu1 %v585_v38 }
 0x2e6   :  { %1728 = vmatprep.subr.mxu1 %v1928_v8 }
 0x2e7   :  { %v489_v40 = vmax.f32 %v487_v37, %v488_v39 }
 0x2e8   :  { %v739_v58 = vpop.permute.xlu0 %738  ;;  %v830_v59 = vpop.permute.xlu1 %829 }
 0x2e9   :  { %v490_v41 = vrot.slane %v489_v40, 2 }
 0x2eb   :  { %v491_v42 = vmax.f32 %v489_v40, %v490_v41 }
 0x2ec   :  { %v908_v60 = vpop.permute.xlu0 %907 }
 0x2ed   :  { %v492_v43 = vrot.slane %v491_v42, 1 }
 0x2ef   :  { %v493_v44 = vmax.f32 %v491_v42, %v492_v43 }
 0x2f1   :  { %v494_v45 = vsub.f32 %v486_v36, %v493_v44 }
 0x2f3   :  { %v495_v46 = vmul.f32 1.442695, %v494_v45 }
 0x2f5   :  { %1821 = vpow2.f32 %v495_v46 }
 0x2ff   :  { %v1822_v47 = vpop.eup %1821 }
 0x300   :  { %v497_v48 = vsel %vm75_vm0, %v1822_v47, 0.0 }
 0x301   :  { %v498_v49 = vrot.slane %v497_v48, 4 }
 0x303   :  { %v499_v50 = vadd.f32 %v498_v49, %v497_v48 }
 0x305   :  { %v500_v51 = vrot.slane %v499_v50, 2 }
 0x307   :  { %v501_v52 = vadd.f32 %v500_v51, %v499_v50 }
 0x309   :  { %v502_v53 = vrot.slane %v501_v52, 1 }
 0x30b   :  { %v503_v54 = vadd.f32 %v502_v53, %v501_v52 }
 0x30d   :  { %1823 = vrcp.f32 %v503_v54 }
 0x317   :  { %v1824_v55 = vpop.eup %1823 }
 0x318   :  { %v505_v56 = vmul.f32 %v1824_v55, %v1822_v47 }
 0x31a   :  { %736 = vrot.lane.b32.xlu0 %v505_v56, %s1936_s12  ;;  %582 = vrot.lane.b32.xlu1 %v505_v56, %s1930_s7 }
 0x31b   :  { %1716 = vmatmul.mubr.msk.f32.vlgmr.msra.gmra.mrb[2].mxu0 %vm160_vm2, %v505_v56 }
 0x31c   :  { %1724 = vmatpush3.msra.mxu0 %v662_v57  ;;  %1725 = vmatprep.mubr.msk.f32.mxu0 %vm1929_vm1, %v1928_v8 }
 0x31d   :  { %1733 = vmatprep.subr.mxu0 %v1928_v8 }
 0x31e   :  { %985 = vrot.lane.b32.xlu0 %v2037_v11, %s1932_s9  ;;  %659 = vrot.lane.b32.xlu1 %v505_v56, %s1935_s2 }
 0x322   :  { %983 = vrot.lane.b32.xlu0 %v2037_v11, %s1935_s2  ;;  %905 = vrot.lane.b32.xlu1 %v2037_v11, %s1930_s7 }
 0x326   :  { %1063 = vrot.lane.b32.xlu1 %v2037_v11, %s1934_s11 }
 0x32a   :  { %1061 = vrot.lane.b32.xlu1 %v2037_v11, %s1936_s12 }
 0x38c   :  { %v583_v61 = vpop.permute.xlu1 %582  ;;  %v737_v62 = vpop.permute.xlu0 %736 }
 0x38d   :  { %1721 = vmatmul.mubr.msk.f32.vlgmr.msra.gmra.mrb[8].mxu1 %vm160_vm2, %v583_v61 }
 0x38e   :  { %1729 = vmatpush3.msra.mxu1 %v739_v58  ;;  %1730 = vmatprep.mubr.msk.f32.mxu1 %vm1929_vm1, %v1928_v8 }
 0x38f   :  { %1738 = vmatprep.subr.mxu1 %v1928_v8 }
 0x390   :  { %v660_v63 = vpop.permute.xlu1 %659  ;;  %v986_v0 = vpop.permute.xlu0 %985 }
 0x391   :  { %1726 = vmatmul.mubr.msk.f32.vlgmr.msra.gmra.mrb[4].mxu0 %vm160_vm2, %v660_v63  ;;  %1731 = vmatmul.mubr.msk.f32.vlgmr.msra.gmra.mrb[10].mxu1 %vm160_vm2, %v737_v62  ;;  %v1496_v62 = vld [vmem:[#allocation7] sm:$0xff]  ;;  %v1497_v63 = vld [vmem:[#allocation7 + $0x8] sm:$0xff] }
 0x392   :  { %1734 = vmatpush3.xpose.msk.msra.mxu0 %vm160_vm2, %v830_v59  ;;  %1735 = vmatprep.mubr.msk.f32.mxu0 %vm1929_vm1, %v1928_v8 }
 0x393   :  { %1743 = vmatprep.subr.mxu0 %v1928_v8  ;;  %1740 = vmatprep.mubr.msk.f32.mxu1 %vm1929_vm1, %v1928_v8 }
 0x394   :  { %v906_v1 = vpop.permute.xlu1 %905  ;;  %v984_v2 = vpop.permute.xlu0 %983 }
 0x395   :  { %1739 = vmatpush3.xpose.msk.msra.mxu1 %vm160_vm2, %v908_v60  ;;  %1736 = vmatmul.mubr.msk.f32.vlgmr.msra.gmra.mrb[6].mxu0 %vm160_vm2, %v2037_v11 }
 0x396   :  { %1744 = vmatpush3.xpose.msk.msra.mxu0 %vm160_vm2, %v986_v0  ;;  %1745 = vmatprep.mubr.msk.f32.mxu0 %vm1929_vm1, %v1928_v8  ;;  %v1792_v0 = vpack.c.bf16 %v1497_v63, %v1496_v62 }
 0x397   :  { %1748 = vmatprep.subr.mxu1 %v1928_v8  ;;  %1753 = vmatprep.subr.mxu0 %v1928_v8 }
 0x398   :  { %1741 = vmatmul.mubr.msk.f32.vlgmr.msra.gmra.mrb[12].mxu1 %vm160_vm2, %v906_v1  ;;  %v1064_v3 = vpop.permute.xlu1 %1063  ;;  %v1498_v1 = vld [vmem:[#allocation7 + $0x10] sm:$0xff] }
 0x399   :  { %1746 = vmatmul.mubr.msk.f32.vlgmr.msra.gmra.mrb[8].mxu0 %vm160_vm2, %v984_v2  ;;  %1749 = vmatpush3.xpose.msk.msra.mxu1 %vm160_vm2, %v1064_v3  ;;  %v1499_v2 = vld [vmem:[#allocation7 + $0x18] sm:$0xff] }
 0x39a   :  { %1750 = vmatprep.mubr.msk.f32.mxu1 %vm1929_vm1, %v1928_v8  ;;  %1758 = vmatprep.subr.mxu1 %v1928_v8  ;;  %v1796_v3 = vpack.c.bf16 %v1499_v2, %v1498_v1 }
 0x39b   :  { %1755 = vmatprep.mubr.msk.f32.mxu0 %vm1929_vm1, %v1928_v8 }
 0x39c   :  { %v1062_v4 = vpop.permute.xlu1 %1061 }
 0x39d   :  { %1751 = vmatmul.mubr.msk.f32.vlgmr.msra.gmra.mrb[14].mxu1 %vm160_vm2, %v1062_v4 }
 0x39e   :  { %1760 = vmatprep.mubr.msk.f32.mxu1 %vm1929_vm1, %v1928_v8 }
 0x3ee   :  { %v2132_v5 = vpop.f32.mrb[2].mxu0 }
 0x3ef   :  { %v1717_v6 = vpop.f32.mrb[3].mxu0 }
 0x460   :  { %v655_v7 = vpop.f32.mrb[8].mxu1 }
 0x461   :  { %v1722_v9 = vpop.f32.mrb[9].mxu1 }
 0x464   :  { %v732_v10 = vpop.f32.mrb[4].mxu0  ;;  %v809_v12 = vpop.f32.mrb[10].mxu1 }
 0x465   :  { %v1727_v13 = vpop.f32.mrb[5].mxu0  ;;  %v1732_v14 = vpop.f32.mrb[11].mxu1 }
 0x468   :  { %v901_v15 = vpop.f32.mrb[6].mxu0 }
 0x469   :  { %v1737_v16 = vpop.f32.mrb[7].mxu0 }
 0x46b   :  { %v979_v17 = vpop.f32.mrb[12].mxu1 }
 0x46c   :  { %1140 = vrot.lane.b32.xlu0 %v979_v17, %s1926_s6  ;;  %v1742_v18 = vpop.f32.mrb[13].mxu1  ;;  %v1057_v19 = vpop.f32.mrb[8].mxu0 }
 0x46d   :  { %1144 = vrot.lane.b32.xlu1 %v1057_v19, %s1937_s13  ;;  %v1747_v20 = vpop.f32.mrb[9].mxu0  ;;  %v1635_v18 = vld [vmem:[%s2202_s4] ss:$0 sm:$0xff] }
 0x470   :  { %v1135_v21 = vpop.f32.mrb[14].mxu1 }
 0x471   :  { %1148 = vrot.lane.b32.xlu0 %v1135_v21, %s1939_s15  ;;  %v1752_v22 = vpop.f32.mrb[15].mxu1  ;;  %1174 = vrot.lane.b32.xlu1 %v2037_v11, %s1938_s14 }
 0x475   :  { %1252 = vrot.lane.b32.xlu0 %v2037_v11, %s1941_s1 }
 0x479   :  { %1329 = vrot.lane.b32.xlu0 %v2037_v11, %s1940_s16 }
 0x47d   :  { %1406 = vrot.lane.b32.xlu0 %v2037_v11, %s1942_s17 }
 0x481   :  { %814 = vrot.lane.b32.xlu0 %v655_v7, %s1926_s6 }
 0x4de   :  { %v1141_v23 = vpop.permute.xlu0 %1140 }
 0x4df   :  { %v1145_v24 = vpop.permute.xlu1 %1144  ;;  %v1151_v25 = vsel %vm160_vm2, %v901_v15, %v1141_v23 }
 0x4e0   :  { %v1152_v26 = vsel %vm482_vm3, %v1151_v25, %v1145_v24 }
 0x4e3   :  { %v1175_v27 = vpop.permute.xlu1 %1174  ;;  %v1149_v28 = vpop.permute.xlu0 %1148 }
 0x4e4   :  { %v1153_v29 = vsel %vm484_vm4, %v1152_v26, %v1149_v28  ;;  %1754 = vmatpush3.msra.mxu0 %v1175_v27 }
 0x4e5   :  { %v1154_v30 = vmul.f32 0.35355338, %v1153_v29  ;;  %1763 = vmatprep.subr.mxu0 %v1928_v8 }
 0x4e7   :  { %v1155_v31 = vsel %vm75_vm0, %v1154_v30, -inf  ;;  %v1253_v32 = vpop.permute.xlu0 %1252 }
 0x4e8   :  { %v1156_v11 = vrot.slane %v1155_v31, 4  ;;  %1759 = vmatpush3.msra.mxu1 %v1253_v32 }
 0x4e9   :  { %1768 = vmatprep.subr.mxu1 %v1928_v8 }
 0x4ea   :  { %v1157_v33 = vmax.f32 %v1155_v31, %v1156_v11 }
 0x4eb   :  { %v1330_v50 = vpop.permute.xlu0 %1329 }
 0x4ec   :  { %v1158_v34 = vrot.slane %v1157_v33, 2 }
 0x4ee   :  { %v1159_v35 = vmax.f32 %v1157_v33, %v1158_v34 }
 0x4ef   :  { %v1407_v52 = vpop.permute.xlu0 %1406 }
 0x4f0   :  { %v1160_v36 = vrot.slane %v1159_v35, 1 }
 0x4f2   :  { %v1161_v37 = vmax.f32 %v1159_v35, %v1160_v36 }
 0x4f3   :  { %v815_v55 = vpop.permute.xlu0 %814 }
 0x4f4   :  { %v1162_v38 = vsub.f32 %v1154_v30, %v1161_v37  ;;  %v825_v57 = vsel %vm160_vm2, %v2132_v5, %v815_v55 }
 0x4f6   :  { %v1163_v39 = vmul.f32 1.442695, %v1162_v38 }
 0x4f8   :  { %1825 = vpow2.f32 %v1163_v39 }
 0x502   :  { %v1826_v40 = vpop.eup %1825 }
 0x503   :  { %v1165_v41 = vsel %vm75_vm0, %v1826_v40, 0.0 }
 0x504   :  { %v1166_v42 = vrot.slane %v1165_v41, 4 }
 0x506   :  { %v1167_v43 = vadd.f32 %v1166_v42, %v1165_v41 }
 0x508   :  { %v1168_v44 = vrot.slane %v1167_v43, 2 }
 0x50a   :  { %v1169_v45 = vadd.f32 %v1168_v44, %v1167_v43 }
 0x50c   :  { %v1170_v46 = vrot.slane %v1169_v45, 1 }
 0x50e   :  { %v1171_v47 = vadd.f32 %v1170_v46, %v1169_v45 }
 0x510   :  { %1827 = vrcp.f32 %v1171_v47 }
 0x51a   :  { %v1828_v48 = vpop.eup %1827 }
 0x51b   :  { %v1173_v49 = vmul.f32 %v1828_v48, %v1826_v40 }
 0x51d   :  { %1250 = vrot.lane.b32.xlu1 %v1173_v49, %s1930_s7  ;;  %1756 = vmatmul.mubr.msk.f32.vlgmr.msra.gmra.mrb[10].mxu0 %vm160_vm2, %v1173_v49 }
 0x51e   :  { %1764 = vmatpush3.msra.mxu0 %v1330_v50  ;;  %1765 = vmatprep.mubr.msk.f32.mxu0 %vm1929_vm1, %v1928_v8 }
 0x51f   :  { %1793 = vmatprep.subr.bf16.mxu0 %v1792_v0 }
 0x521   :  { %1327 = vrot.lane.b32.xlu1 %v1173_v49, %s1935_s2 }
 0x525   :  { %1404 = vrot.lane.b32.xlu1 %v1173_v49, %s1936_s12 }
 0x529   :  { %818 = vrot.lane.b32.xlu1 %v732_v10, %s1937_s13 }
 0x52d   :  { %822 = vrot.lane.b32.xlu1 %v809_v12, %s1939_s15 }
 0x58f   :  { %v1251_v51 = vpop.permute.xlu1 %1250 }
 0x590   :  { %1761 = vmatmul.mubr.msk.f32.vlgmr.msra.gmra.mrb[16].mxu1 %vm160_vm2, %v1251_v51 }
 0x591   :  { %1769 = vmatpush3.msra.mxu1 %v1407_v52  ;;  %1770 = vmatprep.mubr.msk.f32.mxu1 %vm1929_vm1, %v1928_v8 }
 0x593   :  { %v1328_v53 = vpop.permute.xlu1 %1327 }
 0x594   :  { %1766 = vmatmul.mubr.msk.f32.vlgmr.msra.gmra.mrb[12].mxu0 %vm160_vm2, %v1328_v53 }
 0x595   :  { %1795 = vmatpush3.bf16.msra.mxu0 %v1792_v0 }
 0x596   :  { %1797 = vmatprep.subr.bf16.mxu0 %v1796_v3 }
 0x597   :  { %v1405_v54 = vpop.permute.xlu1 %1404 }
 0x598   :  { %1771 = vmatmul.mubr.msk.f32.vlgmr.msra.gmra.mrb[18].mxu1 %vm160_vm2, %v1405_v54 }
 0x599   :  { %1799 = vmatpush3.bf16.msra.mxu0 %v1796_v3 }
 0x59b   :  { %v819_v56 = vpop.permute.xlu1 %818 }
 0x59c   :  { %v826_v58 = vsel %vm482_vm3, %v825_v57, %v819_v56 }
 0x59f   :  { %v823_v59 = vpop.permute.xlu1 %822 }
 0x5a0   :  { %v827_v60 = vsel %vm484_vm4, %v826_v58, %v823_v59 }
 0x5a1   :  { %1781 = vmatprep.mubr.msk.f32.mxu0 %vm75_vm0, %v827_v60 }
 0x5f0   :  { %v1246_v61 = vpop.f32.mrb[10].mxu0 }
 0x5f1   :  { %v1757_v8 = vpop.f32.mrb[11].mxu0 }
 0x663   :  { %v1323_v4 = vpop.f32.mrb[16].mxu1 }
 0x664   :  { %1482 = vrot.lane.b32.xlu0 %v1323_v4, %s1926_s6  ;;  %v1762_v5 = vpop.f32.mrb[17].mxu1 }
 0x667   :  { %v1400_v6 = vpop.f32.mrb[12].mxu0 }
 0x668   :  { %1486 = vrot.lane.b32.xlu0 %v1400_v6, %s1937_s13  ;;  %v1767_v7 = vpop.f32.mrb[13].mxu0 }
 0x66b   :  { %v1477_v9 = vpop.f32.mrb[18].mxu1 }
 0x66c   :  { %1490 = vrot.lane.b32.xlu1 %v1477_v9, %s1939_s15  ;;  %v1772_v10 = vpop.f32.mrb[19].mxu1 }
 0x6d6   :  { %v1483_v12 = vpop.permute.xlu0 %1482 }
 0x6d7   :  { %v1493_v14 = vsel %vm160_vm2, %v1246_v61, %v1483_v12 }
 0x6da   :  { %v1487_v13 = vpop.permute.xlu0 %1486 }
 0x6db   :  { %v1494_v15 = vsel %vm482_vm3, %v1493_v14, %v1487_v13 }
 0x6de   :  { %v1491_v16 = vpop.permute.xlu1 %1490 }
 0x6df   :  { %v1495_v17 = vsel %vm484_vm4, %v1494_v15, %v1491_v16 }
 0x6e0   :  { %1782 = vmatmul.mubr.msk.f32.vlgmr.msra.gmra.mrb[14].mxu0 %vm75_vm0, %v1495_v17 }
 0x7b3   :  { %v1783_v19 = vpop.f32.mrb[14].mxu0 }
 0x7b4   :  { %v1585_v20 = vadd.f32 %v1783_v19, %v1635_v18  ;;  %v1579_v21 = vpop.f32.mrb[15].mxu0 }
 0x7b5   :  { %v1580_v22 = vadd.f32 %v1635_v18, %v1579_v21 }
 0x7b6   :  { %1589 = vst.msk [vmem:[#allocation8 + $0x8] sm:$0xff] %vm75_vm0, %v1585_v20 }
 0x7b7   :  { %1588 = vst.msk [vmem:[#allocation8] sm:$0xff] %vm75_vm0, %v1580_v22 }
 0x7b8   :  { %1906 = shalt.err (!%p1903_p0)
}
 0x7b9   :  { %s1907_s25 = scalar_lea.hbm %s2203_s5, 256 }
 0x7ba   :  { %p1908_p1 = scmp.ne.s32.totalorder %s2203_s5, %s1907_s25  ;;  %p1911_p2 = scmp.lt.u32.totalorder %s1907_s25, %s2203_s5 }
 0x7bc   :  { %p1913_p3 = pnand %p1911_p2, %p1908_p1 }
 0x7be   :  { %1916 = shalt.err (!%p1913_p3)
}
 0x7bf   :  { %1601 = dma.vmem_to_hbm [thread:$0]  %s1596_s22, 256, %s2203_s5, [#allocation4], %s1925_s30, %s1925_s30, %s1926_s6  }
 0x7c0   :  { %1921 = dma.done.wait [#allocation4], 256  }
 0x7c1   :  { %1922 = vsyncadd [#allocation4], 4294967040 }
 0x7c2   :  { %1605 = vsyncpa [#allocation3], 1 }
 0x7c3   :  { %1606 = vsyncpa [#allocation6], 1 }
 0x7c4   :  { %1607 = vsyncpa [#allocation4], 1 }

</bundles_post_ra>
